<compile_context>
chip_gen: v6e
topology: v6e:2x2x1
jax: 0.10.0
libtpu: 0.0.40
codegen_flags: <defaults>
</compile_context>

<pallas_src>
import jax
import jax.numpy as jnp
from jax.experimental import pallas as pl
from jax.experimental.pallas import tpu as pltpu

LANE = 128


def _value_net_kernel(x_ref, w1_ref, w2_ref, w3_ref, b_ref, o_ref):
    fc1 = w1_ref.shape[1]
    fc2 = w2_ref.shape[1]
    n_out_pad = w3_ref.shape[1]        # lane-padded v-head width (MXU-friendly)
    n_actions = o_ref.shape[1]         # true output width (narrow HBM store)

    # Activations cast to bf16 for the MXU; accumulation stays f32.
    x = x_ref[...].astype(jnp.bfloat16)
    b1 = b_ref[0:1, :fc1]              # (1, fc1)        f32
    b2 = b_ref[1:2, :fc2]              # (1, fc2)        f32
    b3 = b_ref[2:3, :n_out_pad]        # (1, n_out_pad)  f32 (zeros past n_actions)

    # fc1 + relu (bias add / relu in f32 on the VPU)
    h1 = jnp.dot(x, w1_ref[...], preferred_element_type=jnp.float32)
    h1 = jnp.maximum(h1 + b1, 0.0).astype(jnp.bfloat16)
    # fc2 + relu
    h2 = jnp.dot(h1, w2_ref[...], preferred_element_type=jnp.float32)
    h2 = jnp.maximum(h2 + b2, 0.0).astype(jnp.bfloat16)
    # v head: padded matmul on the MXU, but only the real columns go to HBM.
    v = jnp.dot(h2, w3_ref[...], preferred_element_type=jnp.float32) + b3
    o_ref[...] = v[:, :n_actions]


def _round_up(x, m):
    return ((x + m - 1) // m) * m


def _choose_tile_b(batch, max_tile_b):
    """Pick a batch tile: one big tile for small batches; >=2 grid steps for
    large batches so the 'parallel' axis can shard across both v7x TCs."""
    if batch <= 256:
        return batch if batch % 8 == 0 else _round_up(batch, 8)
    half = _round_up(pl.cdiv(batch, 2), 8)
    return min(max_tile_b, half)


def prepare_params(params):
    """One-time (per param update) prep of kernel-ready, device-resident params.

    Returns (w1_bf16, w2_bf16, w3_bf16_lane_padded, packed_bias_f32, n_actions).
    Hoisted out of the forward path so steady-state calls pay only for the
    fused kernel itself.
    """
    w1, b1, w2, b2, w3, b3 = params
    fc1_size = w1.shape[1]
    fc2_size = w2.shape[1]
    n_actions = w3.shape[1]
    n_out_pad = max(LANE, _round_up(n_actions, LANE))

    w1b = w1.astype(jnp.bfloat16)
    w2b = w2.astype(jnp.bfloat16)
    w3p = jnp.zeros((fc2_size, n_out_pad), jnp.float32).at[:, :n_actions].set(w3)
    w3b = w3p.astype(jnp.bfloat16)

    # Pack the three biases into a single f32 operand (fewer tiny DMAs).
    hmax = max(fc1_size, fc2_size, n_out_pad)
    bias = jnp.zeros((3, hmax), jnp.float32)
    bias = bias.at[0, :fc1_size].set(b1.reshape(-1))
    bias = bias.at[1, :fc2_size].set(b2.reshape(-1))
    bias = bias.at[2, :n_actions].set(b3.reshape(-1))

    return (w1b, w2b, w3b, bias, n_actions)


def discrete_value_network_forward(state, prepared, *, max_tile_b=2048):
    """Fused MLP forward: relu(x@W1+b1) -> relu(.@W2+b2) -> .@W3+b3.

    `prepared` must come from prepare_params(params).
    """
    w1b, w2b, w3b, bias, n_actions = prepared
    B, input_size = state.shape
    fc1_size = w1b.shape[1]
    fc2_size = w2b.shape[1]
    n_out_pad = w3b.shape[1]

    tile_b = _choose_tile_b(B, max_tile_b)
    grid = (pl.cdiv(B, tile_b),)

    x = state.astype(jnp.float32)

    flops = 2 * B * (input_size * fc1_size
                     + fc1_size * fc2_size
                     + fc2_size * n_out_pad)
    bytes_accessed = (x.size * 4 + w1b.size * 2 + w2b.size * 2 + w3b.size * 2
                      + bias.size * 4 + B * n_actions * 4)

    out = pl.pallas_call(
        _value_net_kernel,
        out_shape=jax.ShapeDtypeStruct((B, n_actions), jnp.float32),
        grid=grid,
        in_specs=[
            pl.BlockSpec((tile_b, input_size), lambda i: (i, 0)),  # streamed x
            pl.BlockSpec(w1b.shape, lambda i: (0, 0)),             # resident weights
            pl.BlockSpec(w2b.shape, lambda i: (0, 0)),
            pl.BlockSpec(w3b.shape, lambda i: (0, 0)),
            pl.BlockSpec(bias.shape, lambda i: (0, 0)),
        ],
        # Narrow, unpadded output store: only n_actions f32 per row hit HBM.
        out_specs=pl.BlockSpec((tile_b, n_actions), lambda i: (i, 0)),
        compiler_params=pltpu.CompilerParams(
            dimension_semantics=("parallel",)),
        cost_estimate=pl.CostEstimate(
            flops=flops, transcendentals=0, bytes_accessed=bytes_accessed),
    )(x, w1b, w2b, w3b, bias)

    return out


def init_params(key, input_size, fc1_size, fc2_size, n_actions):
    """Deterministic init mimicking PyTorch nn.Linear default (U[-1/sqrt(fan_in), +])."""
    def linear(k, fan_in, fan_out):
        kw, kb = jax.random.split(k)
        bound = 1.0 / jnp.sqrt(jnp.float32(fan_in))
        # Stored as [in, out] (transposed vs. torch's [out, in]) for x @ W.
        w = jax.random.uniform(kw, (fan_in, fan_out), jnp.float32, -bound, bound)
        b = jax.random.uniform(kb, (1, fan_out), jnp.float32, -bound, bound)
        return w, b

    k1, k2, k3 = jax.random.split(key, 3)
    w1, b1 = linear(k1, input_size, fc1_size)
    w2, b2 = linear(k2, fc1_size, fc2_size)
    w3, b3 = linear(k3, fc2_size, n_actions)
    return (w1, b1, w2, b2, w3, b3)


def reference_forward(state, params, *, bf16=False):
    """Pure-JAX reference. bf16=True mirrors the kernel's bf16 numeric path."""
    w1, b1, w2, b2, w3, b3 = params
    cast = (lambda a: a.astype(jnp.bfloat16)) if bf16 else (lambda a: a)
    x = cast(state.astype(jnp.float32))
    h1 = jnp.maximum(
        jnp.dot(x, cast(w1), preferred_element_type=jnp.float32) + b1, 0.0)
    h1 = cast(h1)
    h2 = jnp.maximum(
        jnp.dot(h1, cast(w2), preferred_element_type=jnp.float32) + b2, 0.0)
    h2 = cast(h2)
    return jnp.dot(h2, cast(w3), preferred_element_type=jnp.float32) + b3


if __name__ == "__main__":
    # Small shapes consistent with the module's forward:
    # state: [batch, input_size]; fc1_size=fc2_size=256 (module defaults); n_actions=4.
    batch = 8
    input_size = 16
    fc1_size = 256
    fc2_size = 256
    n_actions = 4

    key = jax.random.PRNGKey(0)
    kp, kx = jax.random.split(key)
    params = init_params(kp, input_size, fc1_size, fc2_size, n_actions)
    state = jax.random.normal(kx, (batch, input_size), jnp.float32)

    # One-time param prep (would be cached / redone at param-update time in RL loop).
    prepared = prepare_params(params)
    prepared = jax.block_until_ready(prepared)

    v = discrete_value_network_forward(state, prepared)
    v = jax.block_until_ready(v)
    assert v.shape == (batch, n_actions)

    # Tight check vs a bf16-weight reference (same numeric path as the kernel).
    v_ref_bf16 = reference_forward(state, params, bf16=True)
    assert jnp.allclose(v, v_ref_bf16, atol=1e-3, rtol=1e-3), "mismatch vs bf16 reference"

    # Looser sanity check vs the full-f32 reference (bf16 weight quantization).
    v_ref_f32 = reference_forward(state, params, bf16=False)
    assert jnp.allclose(v, v_ref_f32, atol=5e-2, rtol=5e-2), "mismatch vs f32 reference"

    print("KERNEL_OK")
</pallas_src>

<mosaic_0001>
module attributes {stable_mosaic.version = 11 : i64} {
  func.func @_value_net_kernel(%arg0: i32, %arg1: memref<8x16xf32, #tpu.memory_space<vmem>>, %arg2: memref<16x256xbf16, #tpu.memory_space<vmem>>, %arg3: memref<256x256xbf16, #tpu.memory_space<vmem>>, %arg4: memref<256x128xbf16, #tpu.memory_space<vmem>>, %arg5: memref<3x256xf32, #tpu.memory_space<vmem>>, %arg6: memref<8x4xf32, #tpu.memory_space<vmem>>) attributes {dimension_semantics = [#tpu.dimension_semantics<parallel>], iteration_bounds = array<i64: 1>, scalar_prefetch = 0 : i64, scratch_operands = 0 : i64, tpu.core_type = #tpu.core_type<tc>, window_params = [{transform_indices = @transform_0, window_bounds = array<i64: 8, 16>}, {pipeline_mode = #tpu.pipeline_mode<synchronous>, transform_indices = @transform_1, window_bounds = array<i64: 16, 256>}, {pipeline_mode = #tpu.pipeline_mode<synchronous>, transform_indices = @transform_2, window_bounds = array<i64: 256, 256>}, {pipeline_mode = #tpu.pipeline_mode<synchronous>, transform_indices = @transform_3, window_bounds = array<i64: 256, 128>}, {pipeline_mode = #tpu.pipeline_mode<synchronous>, transform_indices = @transform_4, window_bounds = array<i64: 3, 256>}, {transform_indices = @transform_5, window_bounds = array<i64: 8, 4>}]} {
    %c0 = arith.constant 0 : index
    %c0_0 = arith.constant 0 : index
    %0 = vector.load %arg1[%c0, %c0_0] : memref<8x16xf32, #tpu.memory_space<vmem>>, vector<8x16xf32>
    %1 = arith.truncf %0 : vector<8x16xf32> to vector<8x16xbf16>
    %c0_1 = arith.constant 0 : index
    %c0_2 = arith.constant 0 : index
    %2 = vector.load %arg5[%c0_1, %c0_2] : memref<3x256xf32, #tpu.memory_space<vmem>>, vector<1x256xf32>
    %c1 = arith.constant 1 : index
    %c0_3 = arith.constant 0 : index
    %3 = vector.load %arg5[%c1, %c0_3] : memref<3x256xf32, #tpu.memory_space<vmem>>, vector<1x256xf32>
    %c2 = arith.constant 2 : index
    %c0_4 = arith.constant 0 : index
    %4 = vector.load %arg5[%c2, %c0_4] : memref<3x256xf32, #tpu.memory_space<vmem>>, vector<1x128xf32>
    %c0_5 = arith.constant 0 : index
    %c0_6 = arith.constant 0 : index
    %5 = vector.load %arg2[%c0_5, %c0_6] : memref<16x256xbf16, #tpu.memory_space<vmem>>, vector<16x256xbf16>
    %cst = arith.constant dense<0.000000e+00> : vector<8x256xf32>
    %6 = tpu.matmul %1, %5, %cst {dimension_numbers = #tpu.dot_dimension_numbers<[1], [0], [0], [1], [0, 0, 1, 1], [], []>} : vector<8x16xbf16>, vector<16x256xbf16>, vector<8x256xf32> -> vector<8x256xf32>
    %7 = vector.broadcast %2 : vector<1x256xf32> to vector<8x256xf32>
    %8 = arith.addf %6, %7 : vector<8x256xf32>
    %cst_7 = arith.constant 0.000000e+00 : f32
    %9 = vector.broadcast %cst_7 : f32 to vector<8x256xf32>
    %10 = arith.maximumf %8, %9 : vector<8x256xf32>
    %11 = arith.truncf %10 : vector<8x256xf32> to vector<8x256xbf16>
    %c0_8 = arith.constant 0 : index
    %c0_9 = arith.constant 0 : index
    %12 = vector.load %arg3[%c0_8, %c0_9] : memref<256x256xbf16, #tpu.memory_space<vmem>>, vector<256x256xbf16>
    %cst_10 = arith.constant dense<0.000000e+00> : vector<8x256xf32>
    %13 = tpu.matmul %11, %12, %cst_10 {dimension_numbers = #tpu.dot_dimension_numbers<[1], [0], [0], [1], [0, 0, 1, 1], [], []>} : vector<8x256xbf16>, vector<256x256xbf16>, vector<8x256xf32> -> vector<8x256xf32>
    %14 = vector.broadcast %3 : vector<1x256xf32> to vector<8x256xf32>
    %15 = arith.addf %13, %14 : vector<8x256xf32>
    %cst_11 = arith.constant 0.000000e+00 : f32
    %16 = vector.broadcast %cst_11 : f32 to vector<8x256xf32>
    %17 = arith.maximumf %15, %16 : vector<8x256xf32>
    %18 = arith.truncf %17 : vector<8x256xf32> to vector<8x256xbf16>
    %c0_12 = arith.constant 0 : index
    %c0_13 = arith.constant 0 : index
    %19 = vector.load %arg4[%c0_12, %c0_13] : memref<256x128xbf16, #tpu.memory_space<vmem>>, vector<256x128xbf16>
    %cst_14 = arith.constant dense<0.000000e+00> : vector<8x128xf32>
    %20 = tpu.matmul %18, %19, %cst_14 {dimension_numbers = #tpu.dot_dimension_numbers<[1], [0], [0], [1], [0, 0, 1, 1], [], []>} : vector<8x256xbf16>, vector<256x128xbf16>, vector<8x128xf32> -> vector<8x128xf32>
    %21 = vector.broadcast %4 : vector<1x128xf32> to vector<8x128xf32>
    %22 = arith.addf %20, %21 : vector<8x128xf32>
    %23 = vector.extract_strided_slice %22 {offsets = [0, 0], sizes = [8, 4], strides = [1, 1]} : vector<8x128xf32> to vector<8x4xf32>
    %c0_15 = arith.constant 0 : index
    %c0_16 = arith.constant 0 : index
    %24 = vector.load %arg6[%c0_15, %c0_16] : memref<8x4xf32, #tpu.memory_space<vmem>>, vector<8x4xf32>
    tpu.vector_store %arg6[%c0_15, %c0_16], %23 {strides = array<i32>} : memref<8x4xf32, #tpu.memory_space<vmem>>, vector<8x4xf32>,
    return
  }
  func.func @transform_0(%arg0: i32) -> (i32, i32) {
    %c0_i32 = arith.constant 0 : i32
    %c0_i32_0 = arith.constant 0 : i32
    return %arg0, %c0_i32 : i32, i32
  }
  func.func @transform_1(%arg0: i32) -> (i32, i32) {
    %c0_i32 = arith.constant 0 : i32
    %c0_i32_0 = arith.constant 0 : i32
    %c0_i32_1 = arith.constant 0 : i32
    return %c0_i32, %c0_i32_0 : i32, i32
  }
  func.func @transform_2(%arg0: i32) -> (i32, i32) {
    %c0_i32 = arith.constant 0 : i32
    %c0_i32_0 = arith.constant 0 : i32
    %c0_i32_1 = arith.constant 0 : i32
    return %c0_i32, %c0_i32_0 : i32, i32
  }
  func.func @transform_3(%arg0: i32) -> (i32, i32) {
    %c0_i32 = arith.constant 0 : i32
    %c0_i32_0 = arith.constant 0 : i32
    %c0_i32_1 = arith.constant 0 : i32
    return %c0_i32, %c0_i32_0 : i32, i32
  }
  func.func @transform_4(%arg0: i32) -> (i32, i32) {
    %c0_i32 = arith.constant 0 : i32
    %c0_i32_0 = arith.constant 0 : i32
    %c0_i32_1 = arith.constant 0 : i32
    return %c0_i32, %c0_i32_0 : i32, i32
  }
  func.func @transform_5(%arg0: i32) -> (i32, i32) {
    %c0_i32 = arith.constant 0 : i32
    %c0_i32_0 = arith.constant 0 : i32
    return %arg0, %c0_i32 : i32, i32
  }
}

</mosaic_0001>

<bundles_post_ra>
// kernel: tpu_custom_call.1
= control target key start
LH: loop header
LB: loop body
LE: loop exit
PB: predicated region body
PF: predicated region fallthrough
CT: control target
= control target key end

     0   :  { %10 = vsyncpa [#allocation3], 0  ;;  %s913_s0 = inlined_call_operand.hbm [shape: f32[8,16], index: 0, kind: input, shape index: {}]   ;;  %s914_s1 = inlined_call_operand.hbm [shape: bf16[16,256], index: 1, kind: input, shape index: {}]   ;;  %s915_s2 = inlined_call_operand.hbm [shape: bf16[256,256], index: 2, kind: input, shape index: {}]   ;;  %s916_s3 = inlined_call_operand.hbm [shape: bf16[256,128], index: 3, kind: input, shape index: {}]   ;;  %s917_s4 = inlined_call_operand.hbm [shape: f32[3,256], index: 4, kind: input, shape index: {}]   ;;  %s918_s5 = inlined_call_operand.vmem [shape: f32[8,4], index: 5, kind: output, shape index: {}]  }
   0x1   :  { %11 = vsyncpa [#allocation5], 0 }
   0x2   :  { %12 = vsyncpa [#allocation8], 0  ;;  %s849_s18 = smov [#allocation4]  }
   0x3   :  { %s28_s19 = sshll.u32 %s849_s18, 4  ;;  %s29_s19 = int_to_ptr.vmem [resolvable:$true] %s28_s19 }
   0x4   :  { %s751_s20 = scalar_lea.vmem %s29_s19, 256  ;;  %p756_p1 = scmp.lt.s32.totalorder %s29_s19, %s29_s19 }
   0x5   :  { %p752_p0 = scmp.ne.s32.totalorder %s29_s19, %s751_s20  ;;  %p757_p2 = scmp.lt.s32.totalorder %s751_s20, %s751_s20 }
   0x7   :  { %p758_p3 = por %p757_p2, %p756_p1 }
   0x9   :  { %p759_p4 = pnand %p758_p3, %p752_p0 }
   0xb   :  { %762 = shalt.err (!%p759_p4)
}
   0xc   :  { %s850_s21 = smov 128   ;;  %s851_s22 = smov 8  }
   0xd   :  { %34 = dma.hbm_to_vmem [thread:$0]  %s914_s1, 256, %s29_s19, [#allocation5], %s850_s21, %s850_s21, %s851_s22  }
   0xe   :  { %s852_s25 = smov [#allocation7]  }
   0xf   :  { %s52_s26 = sshll.u32 %s852_s25, 4  ;;  %s53_s26 = int_to_ptr.vmem [resolvable:$true] %s52_s26 }
  0x10   :  { %s771_s27 = scalar_lea.vmem %s53_s26, 2048  ;;  %p776_p6 = scmp.lt.s32.totalorder %s53_s26, %s53_s26 }
  0x11   :  { %p772_p5 = scmp.ne.s32.totalorder %s53_s26, %s771_s27  ;;  %p777_p7 = scmp.lt.s32.totalorder %s771_s27, %s771_s27 }
  0x13   :  { %p778_p8 = por %p777_p7, %p776_p6 }
  0x15   :  { %p779_p9 = pnand %p778_p8, %p772_p5 }
  0x17   :  { %782 = shalt.err (!%p779_p9)
}
  0x18   :  { %s853_s28 = smov 64   ;;  %s854_s29 = smov 4  }
  0x19   :  { %58 = dma.hbm_to_vmem [thread:$0]  %s916_s3, 2048, %s53_s26, [#allocation8], %s853_s28, %s853_s28, %s854_s29  }
  0x1a   :  { %s855_s7 = smov [#allocation2]   ;;  %s856_s9 = smov [#allocation6]  }
  0x1b   :  { %s19_s8 = sshll.u32 %s855_s7, 4  ;;  %s40_s1 = sshll.u32 %s856_s9, 4  ;;  %s20_s8 = int_to_ptr.vmem [resolvable:$true] %s19_s8  ;;  %s41_s1 = int_to_ptr.vmem [resolvable:$true] %s40_s1 }
  0x1c   :  { %s791_s10 = scalar_lea.vmem %s20_s8, 128  ;;  %p796_p11 = scmp.lt.s32.totalorder %s20_s8, %s20_s8 }
  0x1d   :  { %p792_p10 = scmp.ne.s32.totalorder %s20_s8, %s791_s10  ;;  %p797_p12 = scmp.lt.s32.totalorder %s791_s10, %s791_s10 }
  0x1f   :  { %p798_p13 = por %p797_p12, %p796_p11 }
  0x21   :  { %p799_p0 = pnand %p798_p13, %p792_p10 }
  0x23   :  { %802 = shalt.err (!%p799_p0)
}
  0x24   :  { %22 = dma.hbm_to_vmem [thread:$0]  %s913_s0, 128, %s20_s8, [#allocation3]  }
  0x25   :  { %s811_s13 = scalar_lea.vmem %s41_s1, 4096  ;;  %p816_p2 = scmp.lt.s32.totalorder %s41_s1, %s41_s1 }
  0x26   :  { %p812_p1 = scmp.ne.s32.totalorder %s41_s1, %s811_s13  ;;  %p817_p3 = scmp.lt.s32.totalorder %s811_s13, %s811_s13 }
  0x28   :  { %p818_p4 = por %p817_p3, %p816_p2 }
  0x2a   :  { %p819_p5 = pnand %p818_p4, %p812_p1 }
  0x2c   :  { %822 = shalt.err (!%p819_p5)
}
  0x2d   :  { %46 = dma.hbm_to_vmem [thread:$0]  %s915_s2, 4096, %s41_s1, [#allocation5], %s850_s21, %s850_s21, %s851_s22  }
  0x2e   :  { %s857_s15 = smov [#allocation9]  }
  0x2f   :  { %s65_s16 = sshll.u32 %s857_s15, 4  ;;  %s66_s16 = int_to_ptr.vmem [resolvable:$true] %s65_s16 }
  0x30   :  { %s831_s17 = scalar_lea.vmem %s66_s16, 128  ;;  %p836_p7 = scmp.lt.s32.totalorder %s66_s16, %s66_s16 }
  0x31   :  { %p832_p6 = scmp.ne.s32.totalorder %s66_s16, %s831_s17  ;;  %p837_p8 = scmp.lt.s32.totalorder %s831_s17, %s831_s17 }
  0x33   :  { %p838_p9 = por %p837_p8, %p836_p7 }
  0x35   :  { %p839_p10 = pnand %p838_p9, %p832_p6 }
  0x37   :  { %842 = shalt.err (!%p839_p10)
}
  0x38   :  { %68 = dma.hbm_to_vmem [thread:$0]  %s917_s4, 128, %s66_s16, [#allocation8]  }
  0x39   :  { %843 = dma.done.wait [#allocation3], 128  }
  0x3a   :  { %844 = vsyncadd [#allocation3], 4294967168 }
  0x3b   :  { %845 = dma.done.wait [#allocation5], 4352  }
  0x3c   :  { %846 = vsyncadd [#allocation5], 4294962944 }
  0x3d   :  { %847 = dma.done.wait [#allocation8], 2176  }
  0x3e   :  { %848 = vsyncadd [#allocation8], 4294965120  ;;  %v858_v0 = vmov 0   ;;  %v676_v1 = vld [vmem:[#allocation4 + $0x4] ss:$8 sps:$4 sm:$0xff]   ;;  %v85_v3 = vld [vmem:[#allocation2] sm:$0xff]  ;;  %v94_v49 = vlaneseq }
  0x3f   :  { %150 = vmatprep.mubr.bf16.mxu0 %v858_v0  ;;  %v678_v2 = vld [vmem:[#allocation4] ss:$8 sps:$4 sm:$0xff]   ;;  %132 = vmatprep.subr.bf16.mxu0 %v676_v1  ;;  %v86_v4 = vpack.c.bf16 %v85_v3, %v85_v3  ;;  %v679_v5 = vld [vmem:[#allocation6 + $0x74] ss:$8 sps:$4 sm:$0xff]   ;;  %vm114_vm0 = vcmask 130048   ;;  %v731_v41 = vld [vmem:[#allocation7 + $0x68] sm:$0xff]  }
  0x40   :  { %v681_v6 = vld [vmem:[#allocation6 + $0x70] ss:$8 sps:$4 sm:$0xff]   ;;  %133 = vmatpush1.bf16.msra.mxu0 %v678_v2  ;;  %v682_v7 = vld [vmem:[#allocation6 + $0x64] ss:$8 sps:$4 sm:$0xff]   ;;  %366 = vmatprep.subr.bf16.mxu1 %v679_v5  ;;  %v684_v8 = vld [vmem:[#allocation6 + $0x60] ss:$8 sps:$4 sm:$0xff]  }
  0x41   :  { %367 = vmatpush1.bf16.msra.mxu1 %v681_v6  ;;  %v685_v9 = vld [vmem:[#allocation6 + $0x54] ss:$8 sps:$4 sm:$0xff]   ;;  %v687_v10 = vld [vmem:[#allocation6 + $0x50] ss:$8 sps:$4 sm:$0xff]   ;;  %v688_v11 = vld [vmem:[#allocation6 + $0x44] ss:$8 sps:$4 sm:$0xff]  }
  0x42   :  { %368 = vmatprep.subr.bf16.mxu1 %v682_v7  ;;  %v690_v12 = vld [vmem:[#allocation6 + $0x40] ss:$8 sps:$4 sm:$0xff]   ;;  %v691_v13 = vld [vmem:[#allocation6 + $0x34] ss:$8 sps:$4 sm:$0xff]   ;;  %v693_v14 = vld [vmem:[#allocation6 + $0x30] ss:$8 sps:$4 sm:$0xff]  }
  0x43   :  { %594 = vmatmul.mubr.msk.bf16.vlgmr.msra.gmra.mxu0 %vm114_vm0, %v86_v4  ;;  %v694_v15 = vld [vmem:[#allocation6 + $0x24] ss:$8 sps:$4 sm:$0xff]   ;;  %v696_v16 = vld [vmem:[#allocation6 + $0x20] ss:$8 sps:$4 sm:$0xff]   ;;  %v697_v17 = vld [vmem:[#allocation6 + $0x14] ss:$8 sps:$4 sm:$0xff]  }
  0x44   :  { %v699_v18 = vld [vmem:[#allocation6 + $0x10] ss:$8 sps:$4 sm:$0xff]   ;;  %v700_v19 = vld [vmem:[#allocation6 + $0x4] ss:$8 sps:$4 sm:$0xff]   ;;  %v702_v20 = vld [vmem:[#allocation6] ss:$8 sps:$4 sm:$0xff]  }
  0x45   :  { %369 = vmatpush1.bf16.msra.mxu1 %v684_v8  ;;  %v703_v21 = vld [vmem:[#allocation6 + $0xf4] ss:$8 sps:$4 sm:$0xff]   ;;  %v705_v22 = vld [vmem:[#allocation6 + $0xf0] ss:$8 sps:$4 sm:$0xff]   ;;  %v706_v23 = vld [vmem:[#allocation6 + $0xe4] ss:$8 sps:$4 sm:$0xff]  }
  0x46   :  { %370 = vmatprep.subr.bf16.mxu1 %v685_v9  ;;  %v708_v24 = vld [vmem:[#allocation6 + $0xe0] ss:$8 sps:$4 sm:$0xff]   ;;  %v709_v25 = vld [vmem:[#allocation6 + $0xd4] ss:$8 sps:$4 sm:$0xff]   ;;  %v711_v26 = vld [vmem:[#allocation6 + $0xd0] ss:$8 sps:$4 sm:$0xff]  }
  0x47   :  { %v712_v27 = vld [vmem:[#allocation6 + $0xc4] ss:$8 sps:$4 sm:$0xff]   ;;  %v714_v28 = vld [vmem:[#allocation6 + $0xc0] ss:$8 sps:$4 sm:$0xff]   ;;  %v715_v29 = vld [vmem:[#allocation6 + $0xb4] ss:$8 sps:$4 sm:$0xff]  }
  0x48   :  { %v717_v30 = vld [vmem:[#allocation6 + $0xb0] ss:$8 sps:$4 sm:$0xff]   ;;  %v718_v31 = vld [vmem:[#allocation6 + $0xa4] ss:$8 sps:$4 sm:$0xff]   ;;  %v720_v32 = vld [vmem:[#allocation6 + $0xa0] ss:$8 sps:$4 sm:$0xff]  }
  0x49   :  { %371 = vmatpush1.bf16.msra.mxu1 %v687_v10  ;;  %v721_v33 = vld [vmem:[#allocation6 + $0x94] ss:$8 sps:$4 sm:$0xff]   ;;  %v723_v34 = vld [vmem:[#allocation6 + $0x90] ss:$8 sps:$4 sm:$0xff]   ;;  %v724_v35 = vld [vmem:[#allocation6 + $0x84] ss:$8 sps:$4 sm:$0xff]  }
  0x4a   :  { %372 = vmatprep.subr.bf16.mxu1 %v688_v11  ;;  %v726_v36 = vld [vmem:[#allocation6 + $0x80] ss:$8 sps:$4 sm:$0xff]   ;;  %v727_v37 = vld [vmem:[#allocation7 + $0x78] sm:$0xff]   ;;  %v729_v39 = vld [vmem:[#allocation7 + $0x70] sm:$0xff]   ;;  %v95_v50 = vshrl.u32 %v94_v49, 7  ;;  %vm583_vm1 = vcmask 31744  }
  0x4b   :  { %v728_v38 = vld [vmem:[#allocation7 + $0x38] sm:$0xff]   ;;  %644 = vmatprep.subr.bf16.mxu0 %v727_v37  ;;  %v730_v40 = vld [vmem:[#allocation7 + $0x30] sm:$0xff]   ;;  %v732_v42 = vld [vmem:[#allocation7 + $0x28] sm:$0xff]  }
  0x4c   :  { %645 = vmatpush3.bf16.msra.mxu0 %v728_v38  ;;  %v733_v43 = vld [vmem:[#allocation7 + $0x60] sm:$0xff]   ;;  %v735_v45 = vld [vmem:[#allocation7 + $0x58] sm:$0xff]   ;;  %v737_v47 = vld [vmem:[#allocation7 + $0x50] sm:$0xff]   ;;  %v96_v51 = vsub.s32 0, %v95_v50  ;;  %v100_v53 = vsub.s32 1, %v95_v50 }
  0x4d   :  { %373 = vmatpush1.bf16.msra.mxu1 %v690_v12  ;;  %646 = vmatprep.subr.bf16.mxu0 %v729_v39  ;;  %v734_v44 = vld [vmem:[#allocation7 + $0x20] sm:$0xff]   ;;  %v736_v46 = vld [vmem:[#allocation7 + $0x18] sm:$0xff]   ;;  %v738_v48 = vld [vmem:[#allocation7 + $0x10] sm:$0xff]  }
  0x4e   :  { %374 = vmatprep.subr.bf16.mxu1 %v691_v13  ;;  %v87_v52 = vld [vmem:[#allocation9] ss:$4 sm:$0x3]  ;;  %v739_v2 = vld [vmem:[#allocation7 + $0x48] sm:$0xff]  }
  0x4f   :  { %v97_v54 = vrot.slane %v87_v52, %v96_v51  ;;  %v101_v55 = vrot.slane %v87_v52, %v100_v53  ;;  %v740_v3 = vld [vmem:[#allocation7 + $0x8] sm:$0xff]   ;;  %v741_v4 = vld [vmem:[#allocation7 + $0x40] sm:$0xff]  }
  0x50   :  { %647 = vmatpush3.bf16.msra.mxu0 %v730_v40  ;;  %v742_v5 = vld [vmem:[#allocation7] sm:$0xff]  }
  0x51   :  { %375 = vmatpush1.bf16.msra.mxu1 %v693_v14  ;;  %648 = vmatprep.subr.bf16.mxu0 %v731_v41  ;;  %v89_v6 = vld [vmem:[#allocation9 + $0x1] ss:$4 sm:$0x3] }
  0x52   :  { %376 = vmatprep.subr.bf16.mxu1 %v694_v15  ;;  %v199_v7 = vrot.slane %v89_v6, %v96_v51  ;;  %v203_v8 = vrot.slane %v89_v6, %v100_v53 }
  0x54   :  { %649 = vmatpush3.bf16.msra.mxu0 %v732_v42 }
  0x55   :  { %377 = vmatpush1.bf16.msra.mxu1 %v696_v16  ;;  %650 = vmatprep.subr.bf16.mxu0 %v733_v43 }
  0x56   :  { %378 = vmatprep.subr.bf16.mxu1 %v697_v17 }
  0x58   :  { %651 = vmatpush3.bf16.msra.mxu0 %v734_v44 }
  0x59   :  { %379 = vmatpush1.bf16.msra.mxu1 %v699_v18  ;;  %652 = vmatprep.subr.bf16.mxu0 %v735_v45 }
  0x5a   :  { %380 = vmatprep.subr.bf16.mxu1 %v700_v19 }
  0x5c   :  { %653 = vmatpush3.bf16.msra.mxu0 %v736_v46 }
  0x5d   :  { %381 = vmatpush1.bf16.msra.mxu1 %v702_v20  ;;  %654 = vmatprep.subr.bf16.mxu0 %v737_v47  ;;  %v627_v20 = vld [vmem:[#allocation9 + $0x2] ss:$0 sm:$0xff] }
  0x5e   :  { %382 = vmatprep.subr.bf16.mxu1 %v703_v21 }
  0x60   :  { %655 = vmatpush3.bf16.msra.mxu0 %v738_v48 }
  0x61   :  { %383 = vmatpush2.bf16.msra.mxu1 %v705_v22  ;;  %656 = vmatprep.subr.bf16.mxu0 %v739_v2 }
  0x62   :  { %384 = vmatprep.subr.bf16.mxu1 %v706_v23 }
  0x64   :  { %657 = vmatpush3.bf16.msra.mxu0 %v740_v3 }
  0x65   :  { %385 = vmatpush2.bf16.msra.mxu1 %v708_v24  ;;  %658 = vmatprep.subr.bf16.mxu0 %v741_v4 }
  0x66   :  { %386 = vmatprep.subr.bf16.mxu1 %v709_v25 }
  0x68   :  { %659 = vmatpush3.bf16.msra.mxu0 %v742_v5 }
  0x69   :  { %387 = vmatpush2.bf16.msra.mxu1 %v711_v26 }
  0x6a   :  { %388 = vmatprep.subr.bf16.mxu1 %v712_v27 }
  0x6d   :  { %389 = vmatpush2.bf16.msra.mxu1 %v714_v28 }
  0x6e   :  { %390 = vmatprep.subr.bf16.mxu1 %v715_v29 }
  0x71   :  { %391 = vmatpush2.bf16.msra.mxu1 %v717_v30 }
  0x72   :  { %392 = vmatprep.subr.bf16.mxu1 %v718_v31 }
  0x75   :  { %393 = vmatpush2.bf16.msra.mxu1 %v720_v32 }
  0x76   :  { %394 = vmatprep.subr.bf16.mxu1 %v721_v33 }
  0x79   :  { %395 = vmatpush2.bf16.msra.mxu1 %v723_v34 }
  0x7a   :  { %396 = vmatprep.subr.bf16.mxu1 %v724_v35 }
  0x7d   :  { %397 = vmatpush2.bf16.msra.mxu1 %v726_v36 }
 0x103   :  { %v152_v56 = vpop.f32.mrf.mxu0 }
 0x104   :  { %v153_v57 = vadd.f32 %v152_v56, %v97_v54 }
 0x105   :  { %v154_v58 = vpop.f32.mrf.mxu0 }
 0x106   :  { %v155_v59 = vadd.f32 %v154_v58, %v101_v55  ;;  %v159_v60 = vmax.f32 %v153_v57, 0.0 }
 0x107   :  { %v156_v61 = vpop.f32.mrf.mxu0 }
 0x108   :  { %v160_v62 = vmax.f32 %v155_v59, 0.0  ;;  %v161_v1 = vpack.c.bf16 %v159_v60, %v159_v60 }
 0x109   :  { %v157_v63 = vpop.f32.mrf.mxu0 }
 0x10a   :  { %v162_v0 = vpack.c.bf16 %v160_v62, %v160_v62 }
 0x10c   :  { %398 = vmatprep.mubr.bf16.mxu1 %v162_v0 }
 0x10d   :  { %399 = vmatmul.mubr.bf16.vlgmr.msra.gmra.mxu1 %v161_v1 }
 0x1cd   :  { %v400_v9 = vpop.f32.mrf.mxu1 }
 0x1ce   :  { %v401_v10 = vadd.f32 %v400_v9, %v199_v7 }
 0x1cf   :  { %v402_v11 = vpop.f32.mrf.mxu1 }
 0x1d0   :  { %v403_v12 = vadd.f32 %v402_v11, %v203_v8  ;;  %v407_v13 = vmax.f32 %v401_v10, 0.0 }
 0x1d1   :  { %v404_v14 = vpop.f32.mrf.mxu1 }
 0x1d2   :  { %v408_v15 = vmax.f32 %v403_v12, 0.0  ;;  %v409_v18 = vpack.c.bf16 %v407_v13, %v407_v13 }
 0x1d3   :  { %v405_v16 = vpop.f32.mrf.mxu1 }
 0x1d4   :  { %v410_v17 = vpack.c.bf16 %v408_v15, %v408_v15 }
 0x1d6   :  { %575 = vmatprep.mubr.bf16.mxu0 %v410_v17 }
 0x1d7   :  { %576 = vmatmul.mubr.bf16.vlgmr.msra.gmra.mxu0 %v409_v18 }
 0x297   :  { %v660_v19 = vpop.f32.mrf.mxu0 }
 0x299   :  { %v661_v21 = vpop.f32.mrf.mxu0 }
 0x29a   :  { %v662_v22 = vadd.f32 %v661_v21, %v660_v19 }
 0x29b   :  { %v663_v23 = vpop.f32.mrf.mxu0 }
 0x29c   :  { %v578_v24 = vadd.f32 %v662_v22, %v627_v20 }
 0x29d   :  { %v664_v25 = vpop.f32.mrf.mxu0 }
 0x29e   :  { %584 = vst.msk [vmem:[%s918_s5] sm:$0xff] %vm583_vm1, %v578_v24 }
 0x29f   :  { %589 = vsyncpa [#allocation3], 1 }
 0x2a0   :  { %590 = vsyncpa [#allocation5], 1 }
 0x2a1   :  { %591 = vsyncpa [#allocation8], 1 }

</bundles_post_ra>
